<compile_context>
chip_gen: v5e
topology: v5e:2x2
jax: 0.10.0
libtpu: 0.0.40
codegen_flags: <defaults>
</compile_context>

<pallas_src>
import functools
import math

import jax
import jax.numpy as jnp
from jax.experimental import pallas as pl
from jax.experimental.pallas import tpu as pltpu


def make_pe(d_model: int, max_len: int = 5000) -> jnp.ndarray:
    """Sinusoidal positional-encoding table, shape (max_len, 1, d_model) like the torch buffer."""
    position = jnp.arange(max_len, dtype=jnp.float32)[:, None]                       # (L, 1)
    div_term = jnp.exp(
        jnp.arange(0, d_model, 2, dtype=jnp.float32) * (-math.log(10000.0) / d_model)
    )                                                                                # (D/2,)
    pe = jnp.zeros((max_len, d_model), dtype=jnp.float32)
    pe = pe.at[:, 0::2].set(jnp.sin(position * div_term))
    pe = pe.at[:, 1::2].set(jnp.cos(position * div_term))
    return pe[:, None, :]                                                            # (L, 1, D)


def _pick_seq_tile(seq_len: int, row_width: int, *, target_bytes: int = 2 * 1024 * 1024,
                   itemsize: int = 4) -> int:
    """Pick a sequence-tile size: ~target_bytes per x tile, multiple of 8, dividing seq_len."""
    rows = max(8, (target_bytes // max(row_width * itemsize, 1)) // 8 * 8)
    rows = min(rows, seq_len)
    if seq_len % rows == 0 and (rows % 8 == 0 or rows == seq_len):
        return rows
    t = (rows // 8) * 8
    while t >= 8:
        if seq_len % t == 0:
            return t
        t -= 8
    return seq_len  # fallback: single tile (still correct; block == full dim)


def _pe_kernel(seed_ref, x_ref, pe_ref, o_ref, *, dropout_p: float, train: bool, batch: int):
    # x_ref: (ts, B*D) VMEM   pe_ref: (ts, D) VMEM   seed_ref: (1,) SMEM scalar.
    pe_tile = pe_ref[...]                                       # (ts, D)
    if batch > 1:
        # Broadcast pe over the (folded-into-lanes) batch axis: lane-axis concat.
        pe_tile = jnp.concatenate([pe_tile] * batch, axis=-1)   # (ts, B*D)
    y = x_ref[...] + pe_tile                                    # VPU broadcast add

    if train and dropout_p > 0.0:
        if dropout_p >= 1.0:
            y = jnp.zeros_like(y)
        else:
            ts, row_w = y.shape
            # Stateless counter-based RNG: hash(global element index ^ seed).
            # Tiles are independent -> safe with "parallel" grid semantics.
            row0 = (pl.program_id(0) * ts).astype(jnp.uint32)
            rows = jax.lax.broadcasted_iota(jnp.int32, (ts, row_w), 0).astype(jnp.uint32) + row0
            cols = jax.lax.broadcasted_iota(jnp.int32, (ts, row_w), 1).astype(jnp.uint32)
            h = rows * jnp.uint32(row_w) + cols
            h = h ^ seed_ref[0].astype(jnp.uint32)
            h = h * jnp.uint32(0x9E3779B1)            # golden-ratio spread
            h = h ^ (h >> 16)                          # murmur3 fmix32 finalizer
            h = h * jnp.uint32(0x85EBCA6B)
            h = h ^ (h >> 13)
            h = h * jnp.uint32(0xC2B2AE35)
            h = h ^ (h >> 16)
            # keep with prob (1-p): uniform u32 < (1-p) * 2^32  (clamped, no wrap)
            thr = jnp.uint32(min(int((1.0 - dropout_p) * 4294967296.0), 0xFFFFFFFF))
            keep = h < thr
            scale = jnp.float32(1.0 / (1.0 - dropout_p))
            y = jnp.where(keep, y * scale, jnp.zeros_like(y))

    o_ref[...] = y.astype(o_ref.dtype)


def positional_encoding_forward(x, pe, *, seed: int = 0, dropout_p: float = 0.1,
                                train: bool = False, seq_tile: int | None = None,
                                alias_input: bool = False):
    """x: (S, B, D) float32; pe: (max_len, 1, D) float32. Returns (S, B, D)."""
    S, B, D = x.shape
    pe2d = jax.lax.dynamic_slice_in_dim(pe.reshape(pe.shape[0], pe.shape[-1]), 0, S, axis=0)  # (S, D)
    x2d = x.reshape(S, B * D)    # contiguous -> free; lane-dense row width B*D

    ts = seq_tile if seq_tile is not None else _pick_seq_tile(S, B * D)
    assert S % ts == 0, "seq_len must be divisible by seq_tile"

    seed_arr = jnp.array([seed], dtype=jnp.int32)
    kernel = functools.partial(_pe_kernel, dropout_p=float(dropout_p), train=bool(train), batch=B)

    bytes_accessed = 2 * S * B * D * 4 + S * D * 4   # x read + out write + pe read
    cost = pl.CostEstimate(flops=2 * S * B * D, transcendentals=0, bytes_accessed=bytes_accessed)

    out2d = pl.pallas_call(
        kernel,
        out_shape=jax.ShapeDtypeStruct((S, B * D), x.dtype),
        grid_spec=pltpu.PrefetchScalarGridSpec(
            num_scalar_prefetch=1,                       # seed -> SMEM, first kernel arg
            grid=(S // ts,),
            in_specs=[
                pl.BlockSpec((ts, B * D), lambda i, seed: (i, 0)),
                pl.BlockSpec((ts, D), lambda i, seed: (i, 0)),
            ],
            out_specs=pl.BlockSpec((ts, B * D), lambda i, seed: (i, 0)),
        ),
        compiler_params=pltpu.CompilerParams(
            dimension_semantics=("parallel",),           # tiles independent (stateless RNG)
        ),
        cost_estimate=cost,
        # Only pays off when the caller donates x (e.g. jit donate_argnums); off by default
        # so top-level callers can keep using x after the call without a hidden copy.
        input_output_aliases={1: 0} if alias_input else {},
    )(seed_arr, x2d, pe2d)

    return out2d.reshape(S, B, D)


if __name__ == "__main__":
    S, B, D = 8, 2, 32
    key = jax.random.PRNGKey(0)
    x = jax.random.normal(key, (S, B, D), dtype=jnp.float32)
    pe = make_pe(d_model=D, max_len=5000)

    # Eval mode (dropout = identity) -- deterministic, check against reference.
    out_eval = jax.block_until_ready(positional_encoding_forward(x, pe, train=False))
    ref = x + pe[:S]
    assert out_eval.shape == (S, B, D)
    assert jnp.allclose(out_eval, ref, atol=1e-6), "eval-mode mismatch"

    # Train mode: every element is either dropped (exactly 0) or kept (== ref / (1-p)).
    # NOTE: RNG stream differs from torch's, but semantics (Bernoulli mask + 1/(1-p)
    # rescale) match nn.Dropout(p).
    p = 0.1
    out_train = jax.block_until_ready(
        positional_encoding_forward(x, pe, seed=123, dropout_p=p, train=True))
    assert out_train.shape == (S, B, D)
    scaled = ref / (1.0 - p)
    kept = jnp.isclose(out_train, scaled, atol=1e-5)
    dropped = out_train == 0.0
    assert bool(jnp.all(kept | dropped)), "train-mode values are neither kept nor dropped"
    assert bool(jnp.any(kept)) and bool(jnp.any(dropped)), "dropout mask degenerate"

    # Multi-tile grid path (grid > 1) exercising the pipelined / parallel sequence tiling.
    S2 = 32
    x2 = jax.random.normal(jax.random.PRNGKey(1), (S2, B, D), dtype=jnp.float32)
    out2 = jax.block_until_ready(positional_encoding_forward(x2, pe, train=False, seq_tile=8))
    assert jnp.allclose(out2, x2 + pe[:S2], atol=1e-6), "multi-tile eval mismatch"

    print("KERNEL_OK")
</pallas_src>

<mosaic_0001>
module attributes {stable_mosaic.version = 11 : i64} {
  func.func @_pe_kernel(%arg0: i32, %arg1: memref<1xi32, #tpu.memory_space<smem>>, %arg2: memref<8x64xf32, #tpu.memory_space<vmem>>, %arg3: memref<8x32xf32, #tpu.memory_space<vmem>>, %arg4: memref<8x64xf32, #tpu.memory_space<vmem>>) attributes {dimension_semantics = [#tpu.dimension_semantics<parallel>], iteration_bounds = array<i64: 1>, scalar_prefetch = 1 : i64, scratch_operands = 0 : i64, tpu.core_type = #tpu.core_type<tc>, window_params = [{transform_indices = @transform_0, window_bounds = array<i64: 8, 64>}, {transform_indices = @transform_1, window_bounds = array<i64: 8, 32>}, {transform_indices = @transform_2, window_bounds = array<i64: 8, 64>}]} {
    %c0 = arith.constant 0 : index
    %c0_0 = arith.constant 0 : index
    %0 = vector.load %arg3[%c0, %c0_0] : memref<8x32xf32, #tpu.memory_space<vmem>>, vector<8x32xf32>
    %1 = tpu.concatenate %0, %0 in 1 : vector<8x32xf32>, vector<8x32xf32> -> vector<8x64xf32>
    %c0_1 = arith.constant 0 : index
    %c0_2 = arith.constant 0 : index
    %2 = vector.load %arg2[%c0_1, %c0_2] : memref<8x64xf32, #tpu.memory_space<vmem>>, vector<8x64xf32>
    %3 = arith.addf %2, %1 : vector<8x64xf32>
    %c0_3 = arith.constant 0 : index
    %c0_4 = arith.constant 0 : index
    %4 = vector.load %arg4[%c0_3, %c0_4] : memref<8x64xf32, #tpu.memory_space<vmem>>, vector<8x64xf32>
    tpu.vector_store %arg4[%c0_3, %c0_4], %3 {strides = array<i32>} : memref<8x64xf32, #tpu.memory_space<vmem>>, vector<8x64xf32>,
    return
  }
  func.func @transform_0(%arg0: i32, %arg1: memref<1xi32, #tpu.memory_space<smem>>) -> (i32, i32) {
    %c0_i32 = arith.constant 0 : i32
    %c0_i32_0 = arith.constant 0 : i32
    return %arg0, %c0_i32 : i32, i32
  }
  func.func @transform_1(%arg0: i32, %arg1: memref<1xi32, #tpu.memory_space<smem>>) -> (i32, i32) {
    %c0_i32 = arith.constant 0 : i32
    %c0_i32_0 = arith.constant 0 : i32
    return %arg0, %c0_i32 : i32, i32
  }
  func.func @transform_2(%arg0: i32, %arg1: memref<1xi32, #tpu.memory_space<smem>>) -> (i32, i32) {
    %c0_i32 = arith.constant 0 : i32
    %c0_i32_0 = arith.constant 0 : i32
    return %arg0, %c0_i32 : i32, i32
  }
}

</mosaic_0001>

<bundles_post_ra>
// kernel: tpu_custom_call.1
= control target key start
LH: loop header
LB: loop body
LE: loop exit
PB: predicated region body
PF: predicated region fallthrough
CT: control target
= control target key end

     0   :  { %9 = vsyncpa [#allocation5], 0  ;;  %s186_s0 = inlined_call_operand.<no memory space> [shape: s32[1], index: 0, kind: input, shape index: {}]   ;;  %s187_s1 = inlined_call_operand.hbm [shape: f32[8,64], index: 1, kind: input, shape index: {}]   ;;  %s188_s2 = inlined_call_operand.hbm [shape: f32[8,32], index: 2, kind: input, shape index: {}]   ;;  %s189_s3 = inlined_call_operand.hbm [shape: f32[8,64], index: 3, kind: output, shape index: {}]  }
   0x1   :  { %10 = vsyncpa [#allocation8], 0 }
   0x2   :  { %11 = vsyncpa [#allocation6], 0  ;;  %s17_s14 = sshll.u32 %s187_s1, 4  ;;  %s153_s15 = smov [#allocation4]   ;;  %s18_s14 = int_to_ptr.hbm [resolvable:$true] %s17_s14 }
   0x3   :  { %s19_s16 = sshll.u32 %s153_s15, 4  ;;  %s28_s18 = sshll.u32 %s188_s2, 4  ;;  %s20_s16 = int_to_ptr.vmem [resolvable:$true] %s19_s16  ;;  %s29_s18 = int_to_ptr.hbm [resolvable:$true] %s28_s18 }
   0x4   :  { %22 = dma.hbm_to_vmem [thread:$0]  %s18_s14, 128, %s20_s16, [#allocation5]  }
   0x5   :  { %s154_s19 = smov [#allocation7]  }
   0x6   :  { %s30_s20 = sshll.u32 %s154_s19, 4  ;;  %s31_s20 = int_to_ptr.vmem [resolvable:$true] %s30_s20 }
   0x7   :  { %33 = dma.hbm_to_vmem [thread:$0]  %s29_s18, 128, %s31_s20, [#allocation8]  }
   0x8   :  { %147 = dma.done.wait [#allocation5], 128  }
   0x9   :  { %148 = vsyncadd [#allocation5], 4294967168 }
   0xa   :  { %149 = dma.done.wait [#allocation8], 128  }
   0xb   :  { %150 = vsyncadd [#allocation8], 4294967168  ;;  %v42_v0 = vld [vmem:[#allocation7] sm:$0xff]  ;;  %s155_s1 = smov 32   ;;  %vm47_vm0 = vcmask 261120   ;;  %v49_v1 = vld [vmem:[#allocation4] sm:$0xff] }
   0xc   :  { %44 = vrot.lane.b32.xlu0 %v42_v0, %s155_s1  ;;  %s156_s21 = smov [#allocation9]   ;;  %s60_s2 = sshll.u32 %s189_s3, 4  ;;  %vm51_vm1 = vcmask 523264   ;;  %s61_s2 = int_to_ptr.hbm [resolvable:$true] %s60_s2 }
   0xd   :  { %s58_s22 = sshll.u32 %s156_s21, 4  ;;  %s59_s22 = int_to_ptr.vmem [resolvable:$true] %s58_s22 }
  0x7e   :  { %v45_v2 = vpop.permute.xlu0 %44 }
  0x7f   :  { %v48_v3 = vsel %vm47_vm0, %v42_v0, %v45_v2 }
  0x80   :  { %v50_v4 = vadd.f32 %v49_v1, %v48_v3 }
  0x82   :  { %52 = vst.msk [vmem:[#allocation9] sm:$0xff] %vm51_vm1, %v50_v4 }
  0x83   :  { %63 = dma.vmem_to_hbm [thread:$0]  %s59_s22, 128, %s61_s2, [#allocation6]  }
  0x84   :  { %151 = dma.done.wait [#allocation6], 128  }
  0x85   :  { %152 = vsyncadd [#allocation6], 4294967168 }
  0x86   :  { %68 = vsyncpa [#allocation5], 1 }
  0x87   :  { %69 = vsyncpa [#allocation8], 1 }
  0x88   :  { %70 = vsyncpa [#allocation6], 1 }

</bundles_post_ra>
